<compile_context>
chip_gen: v5e
topology: v5e:2x2
jax: 0.10.0
libtpu: 0.0.40
codegen_flags: <defaults>
</compile_context>

<pallas_src>
import jax
import jax.numpy as jnp
import numpy as np
from jax import lax
from jax.experimental import pallas as pl
from jax.experimental.pallas import tpu as pltpu


def _make_awa_kernel(seq_len, ts, needs_s_mask):
    """Online-softmax weighted-average over (tb, ts, F) tiles of x."""

    def kernel(x_ref, w_ref, o_ref, m_sc, l_sc, acc_sc):
        si = pl.program_id(1)

        @pl.when(si == 0)
        def _():
            m_sc[...] = jnp.full_like(m_sc, -jnp.inf)
            l_sc[...] = jnp.zeros_like(l_sc)
            acc_sc[...] = jnp.zeros_like(acc_sc)

        x = x_ref[...].astype(jnp.float32)            # (tb, ts, F)
        w = w_ref[...].astype(jnp.float32)            # (1, 1, F)

        if needs_s_mask:
            # Boundary S-block: positions >= seq_len hold unspecified data.
            # Zero x there (so 0 * garbage can't make NaN) and force the
            # scores to -inf so they drop out of the softmax exactly.
            s_ids = si * ts + lax.broadcasted_iota(jnp.int32, x.shape[:2], 1)
            valid = s_ids < seq_len                   # (tb, ts)
            x = jnp.where(valid[:, :, None], x, 0.0)

        scores = jnp.sum(x * w, axis=-1)              # (tb, ts) f32
        if needs_s_mask:
            scores = jnp.where(valid, scores, -jnp.inf)

        m_prev = m_sc[...]                                               # (tb, 1)
        m_new = jnp.maximum(m_prev, jnp.max(scores, axis=-1, keepdims=True))
        corr = jnp.exp(m_prev - m_new)                                   # (tb, 1)
        p = jnp.exp(scores - m_new)                                      # (tb, ts)
        l_sc[...] = corr * l_sc[...] + jnp.sum(p, axis=-1, keepdims=True)
        # Weighted partial sum over this sequence tile: VPU multiply +
        # sublane reduce.  Kernel is HBM-bound, the MXU gave no benefit here.
        acc_sc[...] = corr * acc_sc[...] + jnp.sum(p[:, :, None] * x, axis=1)
        m_sc[...] = m_new

        @pl.when(si == pl.num_programs(1) - 1)
        def _():
            inv = pl.reciprocal(l_sc[...], approx=False)   # exact EUP recip
            o_ref[...] = (acc_sc[...] * inv).astype(o_ref.dtype)

    return kernel


def _choose_tiles(B, S, F, itemsize, vmem_cap):
    """Pick (tb, ts) from the VMEM budget and dtype sublane packing."""
    pack = {1: 32, 2: 16}.get(itemsize, 8)

    # Per-element VMEM cost of one (tb, ts, F) grid step:
    #   2x double-buffered native-dtype input tile + ~3 f32 working slabs
    #   (f32 upcast of x, x*w product, p*x product).
    per_elem = 2 * itemsize + 3 * 4
    budget = int(vmem_cap * 0.55)
    max_elems = budget // per_elem
    # ~8 MiB of input per step already sits at the HBM roofline; bigger tiles
    # only eat VMEM and reduce batch-grid parallelism (v7x megacore).
    max_elems = min(max_elems, (8 << 20) // itemsize)
    max_elems = max(max_elems, pack * 8 * F)          # never below a minimal tile

    # Batch tile (output block second-to-last dim: multiple of 8 or == B).
    tb = max_elems // (S * F)
    if tb >= B or B <= pack:
        tb = B
    else:
        tb = max(pack, (min(tb, B) // pack) * pack)

    # v7x megacore: keep at least 2 parallel batch steps when B allows it.
    if tb == B and B >= 2 * pack:
        tb = (((B + 1) // 2 + pack - 1) // pack) * pack

    # Sequence tile (online-softmax axis; multiple of the sublane pack or == S).
    ts = max_elems // (tb * F)
    if ts >= S:
        ts = S
    else:
        ts = max(pack, (ts // pack) * pack)
    return tb, ts


def average_weighted_attention(x, weights, *, block_b=None, block_s=None):
    """x: (B, S, F), weights: (F, 1)  ->  (B, F)"""
    B, S, F = x.shape
    dtype = x.dtype
    itemsize = jnp.dtype(dtype).itemsize

    try:
        vmem_cap = int(pltpu.get_tpu_info().vmem_capacity_bytes)
    except Exception:
        vmem_cap = 64 << 20      # smallest per-core VMEM (v7x) -> safe everywhere

    tb, ts = _choose_tiles(B, S, F, itemsize, vmem_cap)
    if block_b is not None:      # test override
        tb = int(min(block_b, B))
    if block_s is not None:      # test override
        ts = int(min(block_s, S))

    nb = pl.cdiv(B, tb)
    ns = pl.cdiv(S, ts)

    w_row = weights.reshape(1, 1, F)             # lane-major weight row
    kernel = _make_awa_kernel(S, ts, needs_s_mask=(S % ts != 0))

    # Advisory cost for XLA's scheduler (memory-bound op, ~4 flops/byte).
    cost = pl.CostEstimate(
        flops=int(4 * B * S * F),
        transcendentals=int(B * S),
        bytes_accessed=int(B * S * F * itemsize + B * F * itemsize
                           + F * jnp.dtype(weights.dtype).itemsize),
    )

    # Raise the scoped-VMEM limit only when this kernel actually needs more
    # than the conservative default; cap by the physical VMEM of this chip.
    step_elems = tb * ts * F
    needed_bytes = ((2 * itemsize + 3 * 4) * step_elems
                    + (2 * itemsize + 4) * tb * F
                    + 8 * tb + (2 << 20))
    compiler_kwargs = dict(dimension_semantics=("parallel", "arbitrary"))
    if needed_bytes > (12 << 20):
        compiler_kwargs["vmem_limit_bytes"] = int(
            min(int(needed_bytes * 1.5), int(vmem_cap * 0.9)))

    out = pl.pallas_call(
        kernel,
        out_shape=jax.ShapeDtypeStruct((B, F), dtype),
        grid_spec=pltpu.PrefetchScalarGridSpec(
            num_scalar_prefetch=0,
            grid=(nb, ns),
            in_specs=[
                pl.BlockSpec((tb, ts, F), lambda b, s: (b, s, 0)),   # x tile
                pl.BlockSpec((1, 1, F), lambda b, s: (0, 0, 0)),     # weights
            ],
            out_specs=pl.BlockSpec((tb, F), lambda b, s: (b, 0)),    # resident over s
            scratch_shapes=[
                pltpu.VMEM((tb, 1), jnp.float32),    # running max m
                pltpu.VMEM((tb, 1), jnp.float32),    # running denom l
                pltpu.VMEM((tb, F), jnp.float32),    # running weighted sum
            ],
        ),
        compiler_params=pltpu.CompilerParams(**compiler_kwargs),
        cost_estimate=cost,
    )(x, w_row)
    return out


def _reference(x, weights):
    scores = jnp.einsum("bsf,fo->bso", x, weights)[..., 0]     # (B, S)
    alphas = jax.nn.softmax(scores, axis=1)                    # (B, S)
    return jnp.sum(x * alphas[..., None], axis=1)              # (B, F)


if __name__ == "__main__":
    key = jax.random.PRNGKey(0)
    kx, kw, kx2, kw2 = jax.random.split(key, 4)

    # Small shape implied by the module: batch=2, max_seq_len=8, n_feats=32.
    B, S, F = 2, 8, 32
    x = jax.random.normal(kx, (B, S, F), dtype=jnp.float32)
    # torch.randn(vector_size, 1) / sqrt(vector_size)
    weights = jax.random.normal(kw, (F, 1), dtype=jnp.float32) / np.sqrt(F)

    out = jax.block_until_ready(average_weighted_attention(x, weights))
    ref = _reference(x, weights)
    np.testing.assert_allclose(np.asarray(out), np.asarray(ref),
                               rtol=1e-4, atol=1e-4)

    # Second check: exercises the padless batch tail (11 % 8 != 0) and the
    # S-tiled online-softmax path with a masked sequence tail (20 % 8 != 0).
    B2, S2, F2 = 11, 20, 128
    x2 = jax.random.normal(kx2, (B2, S2, F2), dtype=jnp.float32)
    w2 = jax.random.normal(kw2, (F2, 1), dtype=jnp.float32) / np.sqrt(F2)
    out2 = jax.block_until_ready(
        average_weighted_attention(x2, w2, block_b=8, block_s=8))
    ref2 = _reference(x2, w2)
    np.testing.assert_allclose(np.asarray(out2), np.asarray(ref2),
                               rtol=1e-4, atol=1e-4)

    print("KERNEL_OK")
</pallas_src>

<mosaic_0001>
module attributes {stable_mosaic.version = 11 : i64} {
  func.func @kernel(%arg0: i32, %arg1: i32, %arg2: memref<2x8x32xf32, #tpu.memory_space<vmem>>, %arg3: memref<1x1x32xf32, #tpu.memory_space<vmem>>, %arg4: memref<2x32xf32, #tpu.memory_space<vmem>>, %arg5: memref<2x1xf32, #tpu.memory_space<vmem>>, %arg6: memref<2x1xf32, #tpu.memory_space<vmem>>, %arg7: memref<2x32xf32, #tpu.memory_space<vmem>>) attributes {dimension_semantics = [#tpu.dimension_semantics<parallel>, #tpu.dimension_semantics<arbitrary>], iteration_bounds = array<i64: 1, 1>, scalar_prefetch = 0 : i64, scratch_operands = 3 : i64, tpu.core_type = #tpu.core_type<tc>, window_params = [{transform_indices = @transform_0, window_bounds = array<i64: 2, 8, 32>}, {pipeline_mode = #tpu.pipeline_mode<synchronous>, transform_indices = @transform_1, window_bounds = array<i64: 1, 1, 32>}, {transform_indices = @transform_2, window_bounds = array<i64: 2, 32>}]} {
    %c0_i32 = arith.constant 0 : i32
    %0 = arith.cmpi eq, %arg1, %c0_i32 : i32
    %1 = arith.extui %0 : i1 to i32
    %c0_i32_0 = arith.constant 0 : i32
    %2 = arith.cmpi ne, %1, %c0_i32_0 : i32
    scf.if %2 {
      %cst_23 = arith.constant 0xFF800000 : f32
      %36 = vector.broadcast %cst_23 : f32 to vector<2x1xf32>
      %c0_24 = arith.constant 0 : index
      %c0_25 = arith.constant 0 : index
      %37 = vector.load %arg5[%c0_24, %c0_25] : memref<2x1xf32, #tpu.memory_space<vmem>>, vector<2x1xf32>
      tpu.vector_store %arg5[%c0_24, %c0_25], %36 {strides = array<i32>} : memref<2x1xf32, #tpu.memory_space<vmem>>, vector<2x1xf32>,
      %cst_26 = arith.constant 0.000000e+00 : f32
      %38 = vector.broadcast %cst_26 : f32 to vector<2x1xf32>
      %c0_27 = arith.constant 0 : index
      %c0_28 = arith.constant 0 : index
      %39 = vector.load %arg6[%c0_27, %c0_28] : memref<2x1xf32, #tpu.memory_space<vmem>>, vector<2x1xf32>
      tpu.vector_store %arg6[%c0_27, %c0_28], %38 {strides = array<i32>} : memref<2x1xf32, #tpu.memory_space<vmem>>, vector<2x1xf32>,
      %cst_29 = arith.constant 0.000000e+00 : f32
      %40 = vector.broadcast %cst_29 : f32 to vector<2x32xf32>
      %c0_30 = arith.constant 0 : index
      %c0_31 = arith.constant 0 : index
      %41 = vector.load %arg7[%c0_30, %c0_31] : memref<2x32xf32, #tpu.memory_space<vmem>>, vector<2x32xf32>
      tpu.vector_store %arg7[%c0_30, %c0_31], %40 {strides = array<i32>} : memref<2x32xf32, #tpu.memory_space<vmem>>, vector<2x32xf32>,
    } else {
    }
    %c0 = arith.constant 0 : index
    %c0_1 = arith.constant 0 : index
    %c0_2 = arith.constant 0 : index
    %3 = vector.load %arg2[%c0, %c0_1, %c0_2] : memref<2x8x32xf32, #tpu.memory_space<vmem>>, vector<2x8x32xf32>
    %c0_3 = arith.constant 0 : index
    %c0_4 = arith.constant 0 : index
    %c0_5 = arith.constant 0 : index
    %4 = vector.load %arg3[%c0_3, %c0_4, %c0_5] : memref<1x1x32xf32, #tpu.memory_space<vmem>>, vector<1x1x32xf32>
    %5 = vector.broadcast %4 : vector<1x1x32xf32> to vector<2x8x32xf32>
    %6 = arith.mulf %3, %5 : vector<2x8x32xf32>
    %cst = arith.constant dense<0.000000e+00> : vector<2x8xf32>
    %7 = vector.multi_reduction <add>, %6, %cst [2] : vector<2x8x32xf32> to vector<2x8xf32>
    %c0_6 = arith.constant 0 : index
    %c0_7 = arith.constant 0 : index
    %8 = vector.load %arg5[%c0_6, %c0_7] : memref<2x1xf32, #tpu.memory_space<vmem>>, vector<2x1xf32>
    %cst_8 = arith.constant dense<0xFF800000> : vector<2xf32>
    %9 = vector.multi_reduction <maximumf>, %7, %cst_8 [1] : vector<2x8xf32> to vector<2xf32>
    %10 = vector.shape_cast %9 : vector<2xf32> to vector<2x1xf32>
    %11 = arith.maximumf %8, %10 : vector<2x1xf32>
    %12 = arith.subf %8, %11 : vector<2x1xf32>
    %13 = math.exp %12 : vector<2x1xf32>
    %14 = vector.broadcast %11 : vector<2x1xf32> to vector<2x8xf32>
    %15 = arith.subf %7, %14 : vector<2x8xf32>
    %16 = math.exp %15 : vector<2x8xf32>
    %c0_9 = arith.constant 0 : index
    %c0_10 = arith.constant 0 : index
    %17 = vector.load %arg6[%c0_9, %c0_10] : memref<2x1xf32, #tpu.memory_space<vmem>>, vector<2x1xf32>
    %18 = arith.mulf %13, %17 : vector<2x1xf32>
    %cst_11 = arith.constant dense<0.000000e+00> : vector<2xf32>
    %19 = vector.multi_reduction <add>, %16, %cst_11 [1] : vector<2x8xf32> to vector<2xf32>
    %20 = vector.shape_cast %19 : vector<2xf32> to vector<2x1xf32>
    %21 = arith.addf %18, %20 : vector<2x1xf32>
    %c0_12 = arith.constant 0 : index
    %c0_13 = arith.constant 0 : index
    %22 = vector.load %arg6[%c0_12, %c0_13] : memref<2x1xf32, #tpu.memory_space<vmem>>, vector<2x1xf32>
    tpu.vector_store %arg6[%c0_12, %c0_13], %21 {strides = array<i32>} : memref<2x1xf32, #tpu.memory_space<vmem>>, vector<2x1xf32>,
    %c0_14 = arith.constant 0 : index
    %c0_15 = arith.constant 0 : index
    %23 = vector.load %arg7[%c0_14, %c0_15] : memref<2x32xf32, #tpu.memory_space<vmem>>, vector<2x32xf32>
    %24 = vector.broadcast %13 : vector<2x1xf32> to vector<2x32xf32>
    %25 = arith.mulf %24, %23 : vector<2x32xf32>
    %26 = vector.shape_cast %16 : vector<2x8xf32> to vector<2x8x1xf32>
    %27 = vector.broadcast %26 : vector<2x8x1xf32> to vector<2x8x32xf32>
    %28 = arith.mulf %27, %3 : vector<2x8x32xf32>
    %cst_16 = arith.constant dense<0.000000e+00> : vector<2x32xf32>
    %29 = vector.multi_reduction <add>, %28, %cst_16 [1] : vector<2x8x32xf32> to vector<2x32xf32>
    %30 = arith.addf %25, %29 : vector<2x32xf32>
    %c0_17 = arith.constant 0 : index
    %c0_18 = arith.constant 0 : index
    %31 = vector.load %arg7[%c0_17, %c0_18] : memref<2x32xf32, #tpu.memory_space<vmem>>, vector<2x32xf32>
    tpu.vector_store %arg7[%c0_17, %c0_18], %30 {strides = array<i32>} : memref<2x32xf32, #tpu.memory_space<vmem>>, vector<2x32xf32>,
    %c0_19 = arith.constant 0 : index
    %c0_20 = arith.constant 0 : index
    %32 = vector.load %arg5[%c0_19, %c0_20] : memref<2x1xf32, #tpu.memory_space<vmem>>, vector<2x1xf32>
    tpu.vector_store %arg5[%c0_19, %c0_20], %11 {strides = array<i32>} : memref<2x1xf32, #tpu.memory_space<vmem>>, vector<2x1xf32>,
    %c0_i32_21 = arith.constant 0 : i32
    %33 = arith.cmpi eq, %arg1, %c0_i32_21 : i32
    %34 = arith.extui %33 : i1 to i32
    %c0_i32_22 = arith.constant 0 : i32
    %35 = arith.cmpi ne, %34, %c0_i32_22 : i32
    scf.if %35 {
      %c0_23 = arith.constant 0 : index
      %c0_24 = arith.constant 0 : index
      %36 = vector.load %arg6[%c0_23, %c0_24] : memref<2x1xf32, #tpu.memory_space<vmem>>, vector<2x1xf32>
      %37 = tpu.reciprocal %36 : vector<2x1xf32> -> vector<2x1xf32>
      %c0_25 = arith.constant 0 : index
      %c0_26 = arith.constant 0 : index
      %38 = vector.load %arg7[%c0_25, %c0_26] : memref<2x32xf32, #tpu.memory_space<vmem>>, vector<2x32xf32>
      %39 = vector.broadcast %37 : vector<2x1xf32> to vector<2x32xf32>
      %40 = arith.mulf %38, %39 : vector<2x32xf32>
      %c0_27 = arith.constant 0 : index
      %c0_28 = arith.constant 0 : index
      %41 = vector.load %arg4[%c0_27, %c0_28] : memref<2x32xf32, #tpu.memory_space<vmem>>, vector<2x32xf32>
      tpu.vector_store %arg4[%c0_27, %c0_28], %40 {strides = array<i32>} : memref<2x32xf32, #tpu.memory_space<vmem>>, vector<2x32xf32>,
    } else {
    }
    return
  }
  func.func @transform_0(%arg0: i32, %arg1: i32) -> (i32, i32, i32) {
    %c0_i32 = arith.constant 0 : i32
    %c0_i32_0 = arith.constant 0 : i32
    return %arg0, %arg1, %c0_i32 : i32, i32, i32
  }
  func.func @transform_1(%arg0: i32, %arg1: i32) -> (i32, i32, i32) {
    %c0_i32 = arith.constant 0 : i32
    %c0_i32_0 = arith.constant 0 : i32
    %c0_i32_1 = arith.constant 0 : i32
    %c0_i32_2 = arith.constant 0 : i32
    return %c0_i32, %c0_i32_0, %c0_i32_1 : i32, i32, i32
  }
  func.func @transform_2(%arg0: i32, %arg1: i32) -> (i32, i32) {
    %c0_i32 = arith.constant 0 : i32
    %c0_i32_0 = arith.constant 0 : i32
    return %arg0, %c0_i32 : i32, i32
  }
}

</mosaic_0001>

<bundles_post_ra>
// kernel: tpu_custom_call.1
= control target key start
LH: loop header
LB: loop body
LE: loop exit
PB: predicated region body
PF: predicated region fallthrough
CT: control target
= control target key end

     0   :  { %7 = vsyncpa [#allocation6], 0  ;;  %s341_s0 = inlined_call_operand.hbm [shape: f32[2,8,32], index: 0, kind: input, shape index: {}]   ;;  %s342_s1 = inlined_call_operand.hbm [shape: f32[1,1,32], index: 1, kind: input, shape index: {}]   ;;  %s343_s2 = inlined_call_operand.hbm [shape: f32[2,32], index: 2, kind: output, shape index: {}]  }
   0x1   :  { %8 = vsyncpa [#allocation9], 0 }
   0x2   :  { %9 = vsyncpa [#allocation7], 0  ;;  %s14_s11 = sshll.u32 %s341_s0, 4  ;;  %s293_s12 = smov [#allocation5]   ;;  %s15_s11 = int_to_ptr.hbm [resolvable:$true] %s14_s11 }
   0x3   :  { %s16_s13 = sshll.u32 %s293_s12, 4  ;;  %s28_s16 = sshll.u32 %s342_s1, 4  ;;  %s17_s13 = int_to_ptr.vmem [resolvable:$true] %s16_s13  ;;  %s29_s16 = int_to_ptr.hbm [resolvable:$true] %s28_s16 }
   0x4   :  { %s294_s17 = smov 128   ;;  %s295_s18 = smov 8  }
   0x5   :  { %22 = dma.hbm_to_vmem [thread:$0]  %s15_s11, 256, %s17_s13, [#allocation6], %s294_s17, %s294_s17, %s295_s18  }
   0x6   :  { %s296_s19 = smov [#allocation8]  }
   0x7   :  { %s30_s20 = sshll.u32 %s296_s19, 4  ;;  %s31_s20 = int_to_ptr.vmem [resolvable:$true] %s30_s20 }
   0x8   :  { %33 = dma.hbm_to_vmem [thread:$0]  %s29_s16, 16, %s31_s20, [#allocation9]  }
   0x9   :  { %287 = dma.done.wait [#allocation6], 256  }
   0xa   :  { %288 = vsyncadd [#allocation6], 4294967040 }
   0xb   :  { %289 = dma.done.wait [#allocation9], 16  }
   0xc   :  { %290 = vsyncadd [#allocation9], 4294967280  ;;  %v51_v0 = vld [vmem:[#allocation5] sm:$0xff]  ;;  %v206_v1 = vld [vmem:[#allocation8] ss:$0 sm:$0xff]  ;;  %vm59_vm0 = vcmask 261120   ;;  %v69_v9 = vlaneseq }
   0xd   :  { %v57_v2 = vmul.f32 %v206_v1, %v51_v0  ;;  %v52_v3 = vld [vmem:[#allocation5 + $0x8] sm:$0xff]  ;;  %vm46_vm1 = vcmask 1024   ;;  %v297_v7 = vmov -inf   ;;  %vm73_vm2 = vcmask 1041409   ;;  %s300_s0 = smov [#allocation10]   ;;  %s184_s23 = sshll.u32 %s343_s2, 4  ;;  %s185_s23 = int_to_ptr.hbm [resolvable:$true] %s184_s23 }
   0xe   :  { %v58_v5 = vmul.f32 %v206_v1, %v52_v3  ;;  %47 = vst.msk [vmem:[#allocation2] sm:$0x3] %vm46_vm1, %v297_v7  ;;  %v70_v10 = vand.u32 127, %v69_v9  ;;  %vm76_vm3 = vcmask 58368   ;;  %v298_v16 = vmov 0   ;;  %s182_s1 = sshll.u32 %s300_s0, 4  ;;  %s183_s1 = int_to_ptr.vmem [resolvable:$true] %s182_s1 }
   0xf   :  { %v60_v4 = vsel %vm59_vm0, %v57_v2, 0.0  ;;  %203 = vset.pattern.permute.xlu1 %v298_v16  ;;  %204 = vset.pattern.permute.xlu2 %v298_v16  ;;  %v299_v17 = vmov 0.0   ;;  %vm49_vm4 = vcmask 254976  }
  0x10   :  { %61 = vadd.xlane.f32.xlu0 %v60_v4  ;;  %v63_v6 = vsel %vm59_vm0, %v58_v5, 0.0  ;;  %48 = vst.msk [vmem:[#allocation3] sm:$0x3] %vm46_vm1, %v299_v17 }
  0x11   :  { %205 = vset.pattern.permute.xlu0 %v298_v16  ;;  %50 = vst.msk [vmem:[#allocation4] sm:$0x3] %vm49_vm4, %v299_v17 }
  0x15   :  { %v66_v18 = vld [vmem:[#allocation2] sm:$0x3] }
  0x17   :  { %v98_v60 = vld [vmem:[#allocation3] sm:$0x3] }
  0x18   :  { %64 = vadd.xlane.f32.xlu0 %v63_v6  ;;  %v118_v53 = vld [vmem:[#allocation4] sm:$0x3] }
  0x83   :  { %v62_v8 = vpop.xlane.xlu0 %61 }
  0x84   :  { %v71_v12 = vperm.slane %v62_v8, %v70_v10 }
  0x8b   :  { %v65_v11 = vpop.xlane.xlu0 %64 }
  0x8c   :  { %v72_v13 = vperm.slane %v65_v11, %v70_v10 }
  0x8e   :  { %v74_v14 = vsel %vm73_vm2, %v72_v13, %v71_v12 }
  0x8f   :  { %v77_v15 = vsel %vm76_vm3, %v74_v14, -inf }
  0x90   :  { %78 = vmax.xlane.f32.xlu1 %v77_v15 }
 0x103   :  { %v79_v19 = vpop.xlane.xlu1 %78 }
 0x104   :  { %v80_v20 = vmax.f32 %v66_v18, %v79_v19 }
 0x106   :  { %v81_v21 = vsub.f32 %v66_v18, %v80_v20  ;;  %150 = vst.msk [vmem:[#allocation2] sm:$0x3] %vm46_vm1, %v80_v20  ;;  %86 = vperm.xlu1 %203, %v80_v20  }
 0x108   :  { %v82_v30 = vmul.f32 1.442695, %v81_v21 }
 0x178   :  { %v87_v22 = vpop.permute.xlu1 %86 }
 0x179   :  { %v88_v23 = vperm.slane %v87_v22, 0  ;;  %v89_v24 = vperm.slane %v87_v22, 1 }
 0x17b   :  { %v92_v25 = vsub.f32 %v62_v8, %v88_v23  ;;  %v93_v27 = vsub.f32 %v65_v11, %v89_v24 }
 0x17d   :  { %v94_v26 = vmul.f32 1.442695, %v92_v25  ;;  %v96_v28 = vmul.f32 1.442695, %v93_v27 }
 0x17f   :  { %207 = vpow2.f32 %v94_v26 }
 0x180   :  { %209 = vpow2.f32 %v96_v28 }
 0x181   :  { %211 = vpow2.f32 %v82_v30 }
 0x185   :  { %v208_v29 = vpop.eup %207 }
 0x186   :  { %103 = vperm.xlu2 %204, %v208_v29   ;;  %v210_v31 = vpop.eup %209 }
 0x187   :  { %v212_v32 = vpop.eup %211 }
 0x188   :  { %v99_v61 = vmul.f32 %v212_v32, %v98_v60 }
 0x18e   :  { %106 = vperm.xlu2 %204, %v210_v31  }
 0x196   :  { %121 = vperm.xlu2 %204, %v212_v32  }
 0x1e0   :  { %v104_v33 = vpop.permute.xlu2 %103 }
 0x1e1   :  { %v127_v34 = vmul.f32 %v104_v33, %v51_v0  ;;  %v108_v39 = vperm.slane %v104_v33, %v70_v10 }
 0x1e3   :  { %v129_v35 = vsel %vm59_vm0, %v127_v34, 0.0 }
 0x1e4   :  { %v130_v36 = vrot.slane %v129_v35, 4 }
 0x1e6   :  { %v131_v37 = vadd.f32 %v130_v36, %v129_v35 }
 0x1e8   :  { %v107_v38 = vpop.permute.xlu2 %106  ;;  %v132_v42 = vrot.slane %v131_v37, 2 }
 0x1e9   :  { %v109_v40 = vperm.slane %v107_v38, %v70_v10  ;;  %v128_v41 = vmul.f32 %v107_v38, %v52_v3 }
 0x1ea   :  { %v133_v47 = vadd.f32 %v132_v42, %v131_v37 }
 0x1eb   :  { %v136_v43 = vsel %vm59_vm0, %v128_v41, 0.0  ;;  %v110_v44 = vsel %vm73_vm2, %v109_v40, %v108_v39 }
 0x1ec   :  { %v137_v45 = vrot.slane %v136_v43, 4  ;;  %v112_v46 = vsel %vm76_vm3, %v110_v44, 0.0  ;;  %v134_v50 = vrot.slane %v133_v47, 1 }
 0x1ed   :  { %113 = vadd.xlane.f32.xlu0 %v112_v46 }
 0x1ee   :  { %v138_v48 = vadd.f32 %v137_v45, %v136_v43  ;;  %v135_v55 = vadd.f32 %v134_v50, %v133_v47 }
 0x1f0   :  { %v139_v49 = vrot.slane %v138_v48, 2  ;;  %v122_v54 = vpop.permute.xlu2 %121 }
 0x1f1   :  { %v124_v57 = vmul.f32 %v122_v54, %v118_v53 }
 0x1f2   :  { %v140_v51 = vadd.f32 %v139_v49, %v138_v48 }
 0x1f4   :  { %v141_v52 = vrot.slane %v140_v51, 1 }
 0x1f6   :  { %v142_v56 = vadd.f32 %v141_v52, %v140_v51 }
 0x1f8   :  { %v145_v58 = vsel %vm73_vm2, %v142_v56, %v135_v55 }
 0x1f9   :  { %v147_v59 = vadd.f32 %v145_v58, %v124_v57 }
 0x1fb   :  { %149 = vst.msk [vmem:[#allocation4] sm:$0x3] %vm49_vm4, %v147_v59 }
 0x202   :  { %v169_v11 = vld [vmem:[#allocation4] sm:$0x3] }
 0x260   :  { %v114_v62 = vpop.xlane.xlu0 %113 }
 0x261   :  { %v115_v63 = vadd.f32 %v114_v62, %v99_v61 }
 0x263   :  { %117 = vst.msk [vmem:[#allocation3] sm:$0x3] %vm46_vm1, %v115_v63 }
 0x26a   :  { %v154_v0 = vld [vmem:[#allocation3] sm:$0x3] }
 0x26b   :  { %213 = vrcp.f32 %v154_v0  ;;  %v166_v4 = vand.u32 2147483648, %v154_v0  ;;  %v164_v6 = vand.u32 2147483647, %v154_v0  ;;  %vm160_vm6 = vweird.f32 %v154_v0 }
 0x26d   :  { %v167_v8 = vor.u32 1.1754944e-38, %v166_v4  ;;  %vm165_vm8 = vcmp.eq.f32.partialorder %v164_v6, 8.507059e+37 }
 0x271   :  { %v214_v1 = vpop.eup %213 }
 0x272   :  { %v156_v2 = vmul.f32 %v214_v1, %v154_v0  ;;  %vm161_vm5 = vweird.f32 %v214_v1 }
 0x273   :  { %vm162_vm7 = vmor %vm160_vm6, %vm161_vm5 }
 0x274   :  { %v157_v3 = vsub.f32 1.0, %v156_v2 }
 0x276   :  { %v158_v5 = vmul.f32 %v214_v1, %v157_v3 }
 0x278   :  { %v159_v7 = vadd.f32 %v214_v1, %v158_v5 }
 0x27a   :  { %v163_v9 = vsel %vm162_vm7, %v214_v1, %v159_v7 }
 0x27b   :  { %v168_v10 = vsel %vm165_vm8, %v167_v8, %v163_v9 }
 0x27c   :  { %172 = vperm.xlu0 %205, %v168_v10  }
 0x2ee   :  { %v173_v12 = vpop.permute.xlu0 %172 }
 0x2ef   :  { %v175_v13 = vmul.f32 %v173_v12, %v169_v11 }
 0x2f1   :  { %176 = vst.msk [vmem:[#allocation10] sm:$0x3] %vm49_vm4, %v175_v13 }
 0x2f2   :  { %187 = dma.vmem_to_hbm [thread:$0]  %s183_s1, 32, %s185_s23, [#allocation7]  }
 0x2f3   :  { %291 = dma.done.wait [#allocation7], 32  }
 0x2f4   :  { %292 = vsyncadd [#allocation7], 4294967264 }
 0x2f5   :  { %192 = vsyncpa [#allocation6], 1 }
 0x2f6   :  { %193 = vsyncpa [#allocation9], 1 }
 0x2f7   :  { %194 = vsyncpa [#allocation7], 1 }

</bundles_post_ra>
